<compile_context>
chip_gen: v7x
topology: tpu7x:2x2x1
jax: 0.10.0
libtpu: 0.0.40
codegen_flags: <defaults>
</compile_context>

<pallas_src>
import functools

import numpy as np
import jax
import jax.numpy as jnp
from jax.experimental import pallas as pl
from jax.experimental.pallas import tpu as pltpu

EPS = 1e-5


def _bottleneck_kernel(w1_ref, w2_ref, w3_ref, b3_ref, sh_ref,   # scalar prefetch (SMEM)
                       x_ref, out_ref, xk_ref, *, sample_len):
    # x block: (C, B, Lrow) in io dtype; Lrow = g * sample_len (lane-packed).
    C, B, Lrow = x_ref.shape
    K = w2_ref.shape[0]
    pad = (K - 1) // 2

    # ---- conv1 (1x1, C->1) + folded bn1 + relu: VPU weighted channel sum.
    #      Per-channel loads keep vreg pressure low at large batch tiles.
    y = x_ref[0].astype(jnp.float32) * w1_ref[0]
    for c in range(1, C):
        y = y + x_ref[c].astype(jnp.float32) * w1_ref[c]
    y = jnp.maximum(y + sh_ref[0], 0.0)                           # (B, Lrow) f32

    # ---- conv2 (K taps, 1->1, "same" zero pad) + bias + folded bn2 + relu:
    #      K roll-MACs.  pltpu.roll runs on the XLU (separate VLIW slot), the
    #      boundary mask handles both zero padding and packed-sample edges.
    pos = jax.lax.broadcasted_iota(jnp.int32, (B, Lrow), 1)
    if sample_len != Lrow:
        pos = pos % sample_len                                    # in-sample position
    acc = y * w2_ref[pad]                                         # center tap
    for j in range(K):
        off = j - pad
        if off == 0:
            continue
        shifted = pltpu.roll(y, (-off) % Lrow, axis=1)            # shifted[i] = y[i+off]
        if off > 0:
            valid = pos < (sample_len - off)
        else:
            valid = pos >= (-off)
        acc = acc + jnp.where(valid, shifted, 0.0) * w2_ref[j]
    xk = jnp.maximum(acc + sh_ref[1], 0.0)                        # (B, Lrow) f32
    xk_ref[...] = xk.astype(xk_ref.dtype)                         # lane-dense store

    # ---- conv3 (1x1, 1->C) + folded bn3 + residual + relu: rank-1 broadcast,
    #      unrolled over channels (C is tiny); per-channel loads/stores.
    for c in range(C):
        out_ref[c] = jnp.maximum(
            xk * w3_ref[c] + b3_ref[c] + x_ref[c].astype(jnp.float32), 0.0
        ).astype(out_ref.dtype)


def fold_bn(gamma, beta, mean, var):
    scale = gamma / jnp.sqrt(var + EPS)
    shift = beta - mean * scale
    return scale, shift


def bottleneck_pallas(x, params, *, batch_tile=512, io_dtype=jnp.float32,
                      lane_pack=True):
    """x: (N, C, L) NCL layout, as nn.Conv1d expects. Returns (out, xk)."""
    N, C, L = x.shape
    K = int(params["w2"].shape[0])
    assert (K - 1) // 2 < L, "kernel_size too large for sequence length"

    # ---- host-side folding: eval-mode BN folded into the conv weights.
    s1, b1 = fold_bn(params["g1"], params["be1"], params["m1"], params["v1"])
    s2, b2 = fold_bn(params["g2"], params["be2"], params["m2"], params["v2"])
    s3, b3 = fold_bn(params["g3"], params["be3"], params["m3"], params["v3"])
    w1s = (params["w1"] * s1).astype(jnp.float32)                 # (C,)
    w2s = (params["w2"] * s2).astype(jnp.float32)                 # (K,)
    w3s = (params["w3"] * s3).astype(jnp.float32)                 # (C,)
    b3s = b3.astype(jnp.float32)                                  # (C,)
    shifts = jnp.stack(
        [b1, params["bias2"] * s2 + b2]).astype(jnp.float32)      # (2,)

    # ---- lane packing: g samples side by side along the lane axis when L<128.
    g = max(1, 128 // L) if lane_pack else 1
    n1 = ((N + g - 1) // g) * g
    xp = x if n1 == N else jnp.pad(x, ((0, n1 - N), (0, 0), (0, 0)))
    G = n1 // g
    Lrow = g * L
    # (N1, C, L) -> (C, G, g*L): channels off the sublane axis (CNL blocks).
    xp = xp.reshape(G, g, C, L).transpose(2, 0, 1, 3).reshape(C, G, Lrow)

    # ---- batch-row tiling: pad so every grid step is a full tile.
    bt = min(int(batch_tile), G)
    if bt < G and bt % 8:
        bt = max(8, (bt // 8) * 8)
    Gp = ((G + bt - 1) // bt) * bt
    if Gp != G:
        xp = jnp.pad(xp, ((0, 0), (0, Gp - G), (0, 0)))
    xp = xp.astype(io_dtype)

    grid = (Gp // bt,)
    grid_spec = pltpu.PrefetchScalarGridSpec(
        num_scalar_prefetch=5,                                    # w1s,w2s,w3s,b3s,shifts
        grid=grid,
        in_specs=[pl.BlockSpec((C, bt, Lrow), lambda n, *_: (0, n, 0))],
        out_specs=[pl.BlockSpec((C, bt, Lrow), lambda n, *_: (0, n, 0)),
                   pl.BlockSpec((bt, Lrow), lambda n, *_: (n, 0))],
    )

    out_p, xk_p = pl.pallas_call(
        functools.partial(_bottleneck_kernel, sample_len=L),
        out_shape=(jax.ShapeDtypeStruct((C, Gp, Lrow), io_dtype),
                   jax.ShapeDtypeStruct((Gp, Lrow), io_dtype)),
        grid_spec=grid_spec,
        compiler_params=pltpu.CompilerParams(
            dimension_semantics=("parallel",)),
    )(w1s, w2s, w3s, b3s, shifts, xp)

    # ---- unpack back to (N, C, L) / (N, 1, L).
    out = (out_p[:, :G]
           .reshape(C, G, g, L)
           .transpose(1, 2, 0, 3)
           .reshape(n1, C, L)[:N])
    xk = xk_p[:G].reshape(n1, L)[:N].reshape(N, 1, L)
    return out, xk


def bottleneck_ref(x, params):
    """Pure-JAX reference (independent conv implementation)."""
    N, C, L = x.shape
    K = params["w2"].shape[0]
    pad = (K - 1) // 2
    s1, b1 = fold_bn(params["g1"], params["be1"], params["m1"], params["v1"])
    s2, b2 = fold_bn(params["g2"], params["be2"], params["m2"], params["v2"])
    s3, b3 = fold_bn(params["g3"], params["be3"], params["m3"], params["v3"])

    y = jnp.einsum("c,ncl->nl", params["w1"], x)[:, None, :]             # (N,1,L)
    y = jax.nn.relu(y * s1 + b1)
    yp = jnp.pad(y, ((0, 0), (0, 0), (pad, pad)))
    acc = sum(params["w2"][j] * yp[:, :, j:j + L] for j in range(K)) + params["bias2"]
    xk = jax.nn.relu(acc * s2 + b2)                                       # (N,1,L)
    out = params["w3"][None, :, None] * xk                                # (N,C,L)
    out = out * s3[None, :, None] + b3[None, :, None]
    out = jax.nn.relu(out + x)
    return out, xk


def make_params(key, C, K):
    ks = jax.random.split(key, 16)
    return {
        "w1": 0.5 * jax.random.normal(ks[1], (C,), jnp.float32),         # conv1 (1,C,1)
        "w2": 0.5 * jax.random.normal(ks[2], (K,), jnp.float32),         # conv2 (1,1,K)
        "bias2": 0.1 * jax.random.normal(ks[3], (), jnp.float32),        # conv2 bias
        "w3": 0.5 * jax.random.normal(ks[4], (C,), jnp.float32),         # conv3 (C,1,1)
        # bn1 / bn2 (num_features = 1)
        "g1": 1.0 + 0.1 * jax.random.normal(ks[5], (), jnp.float32),
        "be1": 0.1 * jax.random.normal(ks[6], (), jnp.float32),
        "m1": 0.1 * jax.random.normal(ks[7], (), jnp.float32),
        "v1": 0.5 + jnp.abs(jax.random.normal(ks[8], (), jnp.float32)),
        "g2": 1.0 + 0.1 * jax.random.normal(ks[9], (), jnp.float32),
        "be2": 0.1 * jax.random.normal(ks[10], (), jnp.float32),
        "m2": 0.1 * jax.random.normal(ks[11], (), jnp.float32),
        "v2": 0.5 + jnp.abs(jax.random.normal(ks[12], (), jnp.float32)),
        # bn3 (num_features = inplanes)
        "g3": 1.0 + 0.1 * jax.random.normal(ks[13], (C,), jnp.float32),
        "be3": 0.1 * jax.random.normal(ks[14], (C,), jnp.float32),
        "m3": 0.1 * jax.random.normal(ks[15], (C,), jnp.float32),
        "v3": 0.5 + jnp.abs(jax.random.normal(ks[0], (C,), jnp.float32)),
    }


def run_case(key, N, C, L, K, *, batch_tile=512, io_dtype=jnp.float32,
             rtol=2e-5, atol=2e-5):
    kx, kp = jax.random.split(key)
    x = jax.random.normal(kx, (N, C, L), jnp.float32)
    params = make_params(kp, C, K)

    out, xk = bottleneck_pallas(x, params, batch_tile=batch_tile,
                                io_dtype=io_dtype)
    jax.block_until_ready((out, xk))

    out_ref, xk_ref = bottleneck_ref(x, params)
    np.testing.assert_allclose(np.asarray(out, dtype=np.float32),
                               np.asarray(out_ref), rtol=rtol, atol=atol)
    np.testing.assert_allclose(np.asarray(xk, dtype=np.float32),
                               np.asarray(xk_ref), rtol=rtol, atol=atol)


if __name__ == "__main__":
    key = jax.random.PRNGKey(0)
    k1, k2, k3, k4 = jax.random.split(key, 4)

    # Module spec shape: inplanes=4, kernel_size=3, stride=1.  L=16 exercises
    # the lane-packing path (g=8) plus ragged-N padding (N=2 -> padded to 8).
    run_case(k1, N=2, C=4, L=16, K=3)
    # Lane-dense L=128, one full-width grid step.
    run_case(k2, N=16, C=4, L=128, K=3)
    # Multi-step grid (padded to 3 tiles of 16 rows), kernel_size=5.
    run_case(k3, N=40, C=4, L=128, K=5, batch_tile=16)
    # bf16-streamed I/O (f32 accumulation in-kernel), looser tolerance.
    run_case(k4, N=16, C=4, L=128, K=3, io_dtype=jnp.bfloat16,
             rtol=5e-2, atol=1e-1)

    print("KERNEL_OK")
</pallas_src>

<mosaic_0001>
module attributes {stable_mosaic.version = 11 : i64} {
  func.func @_bottleneck_kernel(%arg0: i32, %arg1: memref<4xf32, #tpu.memory_space<smem>>, %arg2: memref<3xf32, #tpu.memory_space<smem>>, %arg3: memref<4xf32, #tpu.memory_space<smem>>, %arg4: memref<4xf32, #tpu.memory_space<smem>>, %arg5: memref<2xf32, #tpu.memory_space<smem>>, %arg6: memref<4x1x128xf32, #tpu.memory_space<vmem>>, %arg7: memref<4x1x128xf32, #tpu.memory_space<vmem>>, %arg8: memref<1x128xf32, #tpu.memory_space<vmem>>) attributes {dimension_semantics = [#tpu.dimension_semantics<parallel>], iteration_bounds = array<i64: 1>, scalar_prefetch = 5 : i64, scratch_operands = 0 : i64, tpu.core_type = #tpu.core_type<tc>, window_params = [{transform_indices = @transform_0, window_bounds = array<i64: 4, 1, 128>}, {transform_indices = @transform_1, window_bounds = array<i64: 4, 1, 128>}, {transform_indices = @transform_2, window_bounds = array<i64: 1, 128>}]} {
    %c0 = arith.constant 0 : index
    %c0_0 = arith.constant 0 : index
    %c0_1 = arith.constant 0 : index
    %0 = vector.load %arg6[%c0, %c0_0, %c0_1] : memref<4x1x128xf32, #tpu.memory_space<vmem>>, vector<1x1x128xf32>
    %1 = vector.shape_cast %0 : vector<1x1x128xf32> to vector<1x128xf32>
    %c0_2 = arith.constant 0 : index
    %2 = memref.load %arg1[%c0_2] : memref<4xf32, #tpu.memory_space<smem>>
    %3 = vector.broadcast %2 : f32 to vector<1x128xf32>
    %4 = arith.mulf %1, %3 : vector<1x128xf32>
    %c1 = arith.constant 1 : index
    %c0_3 = arith.constant 0 : index
    %c0_4 = arith.constant 0 : index
    %5 = vector.load %arg6[%c1, %c0_3, %c0_4] : memref<4x1x128xf32, #tpu.memory_space<vmem>>, vector<1x1x128xf32>
    %6 = vector.shape_cast %5 : vector<1x1x128xf32> to vector<1x128xf32>
    %c1_5 = arith.constant 1 : index
    %7 = memref.load %arg1[%c1_5] : memref<4xf32, #tpu.memory_space<smem>>
    %8 = vector.broadcast %7 : f32 to vector<1x128xf32>
    %9 = arith.mulf %6, %8 : vector<1x128xf32>
    %10 = arith.addf %4, %9 : vector<1x128xf32>
    %c2 = arith.constant 2 : index
    %c0_6 = arith.constant 0 : index
    %c0_7 = arith.constant 0 : index
    %11 = vector.load %arg6[%c2, %c0_6, %c0_7] : memref<4x1x128xf32, #tpu.memory_space<vmem>>, vector<1x1x128xf32>
    %12 = vector.shape_cast %11 : vector<1x1x128xf32> to vector<1x128xf32>
    %c2_8 = arith.constant 2 : index
    %13 = memref.load %arg1[%c2_8] : memref<4xf32, #tpu.memory_space<smem>>
    %14 = vector.broadcast %13 : f32 to vector<1x128xf32>
    %15 = arith.mulf %12, %14 : vector<1x128xf32>
    %16 = arith.addf %10, %15 : vector<1x128xf32>
    %c3 = arith.constant 3 : index
    %c0_9 = arith.constant 0 : index
    %c0_10 = arith.constant 0 : index
    %17 = vector.load %arg6[%c3, %c0_9, %c0_10] : memref<4x1x128xf32, #tpu.memory_space<vmem>>, vector<1x1x128xf32>
    %18 = vector.shape_cast %17 : vector<1x1x128xf32> to vector<1x128xf32>
    %c3_11 = arith.constant 3 : index
    %19 = memref.load %arg1[%c3_11] : memref<4xf32, #tpu.memory_space<smem>>
    %20 = vector.broadcast %19 : f32 to vector<1x128xf32>
    %21 = arith.mulf %18, %20 : vector<1x128xf32>
    %22 = arith.addf %16, %21 : vector<1x128xf32>
    %c0_12 = arith.constant 0 : index
    %23 = memref.load %arg5[%c0_12] : memref<2xf32, #tpu.memory_space<smem>>
    %24 = vector.broadcast %23 : f32 to vector<1x128xf32>
    %25 = arith.addf %22, %24 : vector<1x128xf32>
    %cst = arith.constant 0.000000e+00 : f32
    %26 = vector.broadcast %cst : f32 to vector<1x128xf32>
    %27 = arith.maximumf %25, %26 : vector<1x128xf32>
    %28 = tpu.iota {dimensions = array<i32: 1>} : vector<1x128xi32>
    %c16_i32 = arith.constant 16 : i32
    %c0_i32 = arith.constant 0 : i32
    %29 = arith.cmpi eq, %c16_i32, %c0_i32 : i32
    %c1_i32 = arith.constant 1 : i32
    %30 = arith.select %29, %c1_i32, %c16_i32 : i32
    %31 = vector.broadcast %30 : i32 to vector<1x128xi32>
    %32 = arith.remsi %28, %31 : vector<1x128xi32>
    %c0_i32_13 = arith.constant 0 : i32
    %33 = vector.broadcast %c0_i32_13 : i32 to vector<1x128xi32>
    %34 = arith.cmpi ne, %32, %33 : vector<1x128xi32>
    %c0_i32_14 = arith.constant 0 : i32
    %35 = vector.broadcast %c0_i32_14 : i32 to vector<1x128xi32>
    %36 = arith.cmpi slt, %32, %35 : vector<1x128xi32>
    %c0_i32_15 = arith.constant 0 : i32
    %37 = arith.cmpi slt, %30, %c0_i32_15 : i32
    %38 = vector.broadcast %37 : i1 to vector<1x128xi1>
    %39 = vector.broadcast %38 : vector<1x128xi1> to vector<1x128xi1>
    %40 = arith.xori %36, %39 : vector<1x128xi1>
    %41 = arith.andi %40, %34 : vector<1x128xi1>
    %42 = vector.broadcast %30 : i32 to vector<1x128xi32>
    %43 = arith.addi %32, %42 : vector<1x128xi32>
    %44 = arith.select %41, %43, %32 : vector<1x128xi1>, vector<1x128xi32>
    %c1_16 = arith.constant 1 : index
    %45 = memref.load %arg2[%c1_16] : memref<3xf32, #tpu.memory_space<smem>>
    %46 = vector.broadcast %45 : f32 to vector<1x128xf32>
    %47 = arith.mulf %27, %46 : vector<1x128xf32>
    %c1_i32_17 = arith.constant 1 : i32
    %48 = tpu.dynamic_rotate %27 by %c1_i32_17 dim 1 : vector<1x128xf32>, i32 -> vector<1x128xf32>
    %c1_i32_18 = arith.constant 1 : i32
    %49 = vector.broadcast %c1_i32_18 : i32 to vector<1x128xi32>
    %50 = arith.cmpi sge, %44, %49 : vector<1x128xi32>
    %cst_19 = arith.constant 0.000000e+00 : f32
    %51 = vector.broadcast %cst_19 : f32 to vector<1x128xf32>
    %52 = arith.select %50, %48, %51 : vector<1x128xi1>, vector<1x128xf32>
    %c0_20 = arith.constant 0 : index
    %53 = memref.load %arg2[%c0_20] : memref<3xf32, #tpu.memory_space<smem>>
    %54 = vector.broadcast %53 : f32 to vector<1x128xf32>
    %55 = arith.mulf %52, %54 : vector<1x128xf32>
    %56 = arith.addf %47, %55 : vector<1x128xf32>
    %c127_i32 = arith.constant 127 : i32
    %57 = tpu.dynamic_rotate %27 by %c127_i32 dim 1 : vector<1x128xf32>, i32 -> vector<1x128xf32>
    %c15_i32 = arith.constant 15 : i32
    %58 = vector.broadcast %c15_i32 : i32 to vector<1x128xi32>
    %59 = arith.cmpi slt, %44, %58 : vector<1x128xi32>
    %cst_21 = arith.constant 0.000000e+00 : f32
    %60 = vector.broadcast %cst_21 : f32 to vector<1x128xf32>
    %61 = arith.select %59, %57, %60 : vector<1x128xi1>, vector<1x128xf32>
    %c2_22 = arith.constant 2 : index
    %62 = memref.load %arg2[%c2_22] : memref<3xf32, #tpu.memory_space<smem>>
    %63 = vector.broadcast %62 : f32 to vector<1x128xf32>
    %64 = arith.mulf %61, %63 : vector<1x128xf32>
    %65 = arith.addf %56, %64 : vector<1x128xf32>
    %c1_23 = arith.constant 1 : index
    %66 = memref.load %arg5[%c1_23] : memref<2xf32, #tpu.memory_space<smem>>
    %67 = vector.broadcast %66 : f32 to vector<1x128xf32>
    %68 = arith.addf %65, %67 : vector<1x128xf32>
    %cst_24 = arith.constant 0.000000e+00 : f32
    %69 = vector.broadcast %cst_24 : f32 to vector<1x128xf32>
    %70 = arith.maximumf %68, %69 : vector<1x128xf32>
    %c0_25 = arith.constant 0 : index
    %c0_26 = arith.constant 0 : index
    %71 = vector.load %arg8[%c0_25, %c0_26] : memref<1x128xf32, #tpu.memory_space<vmem>>, vector<1x128xf32>
    tpu.vector_store %arg8[%c0_25, %c0_26], %70 {strides = array<i32>} : memref<1x128xf32, #tpu.memory_space<vmem>>, vector<1x128xf32>,
    %c0_27 = arith.constant 0 : index
    %72 = memref.load %arg3[%c0_27] : memref<4xf32, #tpu.memory_space<smem>>
    %73 = vector.broadcast %72 : f32 to vector<1x128xf32>
    %74 = arith.mulf %70, %73 : vector<1x128xf32>
    %c0_28 = arith.constant 0 : index
    %75 = memref.load %arg4[%c0_28] : memref<4xf32, #tpu.memory_space<smem>>
    %76 = vector.broadcast %75 : f32 to vector<1x128xf32>
    %77 = arith.addf %74, %76 : vector<1x128xf32>
    %c0_29 = arith.constant 0 : index
    %c0_30 = arith.constant 0 : index
    %c0_31 = arith.constant 0 : index
    %78 = vector.load %arg6[%c0_29, %c0_30, %c0_31] : memref<4x1x128xf32, #tpu.memory_space<vmem>>, vector<1x1x128xf32>
    %79 = vector.shape_cast %78 : vector<1x1x128xf32> to vector<1x128xf32>
    %80 = arith.addf %77, %79 : vector<1x128xf32>
    %cst_32 = arith.constant 0.000000e+00 : f32
    %81 = vector.broadcast %cst_32 : f32 to vector<1x128xf32>
    %82 = arith.maximumf %80, %81 : vector<1x128xf32>
    %c0_33 = arith.constant 0 : index
    %c0_34 = arith.constant 0 : index
    %c0_35 = arith.constant 0 : index
    %83 = vector.load %arg7[%c0_33, %c0_34, %c0_35] : memref<4x1x128xf32, #tpu.memory_space<vmem>>, vector<1x1x128xf32>
    %84 = vector.shape_cast %83 : vector<1x1x128xf32> to vector<1x128xf32>
    %85 = vector.shape_cast %82 : vector<1x128xf32> to vector<1x1x128xf32>
    tpu.vector_store %arg7[%c0_33, %c0_34, %c0_35], %85 {strides = array<i32>} : memref<4x1x128xf32, #tpu.memory_space<vmem>>, vector<1x1x128xf32>,
    %c1_36 = arith.constant 1 : index
    %86 = memref.load %arg3[%c1_36] : memref<4xf32, #tpu.memory_space<smem>>
    %87 = vector.broadcast %86 : f32 to vector<1x128xf32>
    %88 = arith.mulf %70, %87 : vector<1x128xf32>
    %c1_37 = arith.constant 1 : index
    %89 = memref.load %arg4[%c1_37] : memref<4xf32, #tpu.memory_space<smem>>
    %90 = vector.broadcast %89 : f32 to vector<1x128xf32>
    %91 = arith.addf %88, %90 : vector<1x128xf32>
    %c1_38 = arith.constant 1 : index
    %c0_39 = arith.constant 0 : index
    %c0_40 = arith.constant 0 : index
    %92 = vector.load %arg6[%c1_38, %c0_39, %c0_40] : memref<4x1x128xf32, #tpu.memory_space<vmem>>, vector<1x1x128xf32>
    %93 = vector.shape_cast %92 : vector<1x1x128xf32> to vector<1x128xf32>
    %94 = arith.addf %91, %93 : vector<1x128xf32>
    %cst_41 = arith.constant 0.000000e+00 : f32
    %95 = vector.broadcast %cst_41 : f32 to vector<1x128xf32>
    %96 = arith.maximumf %94, %95 : vector<1x128xf32>
    %c1_42 = arith.constant 1 : index
    %c0_43 = arith.constant 0 : index
    %c0_44 = arith.constant 0 : index
    %97 = vector.load %arg7[%c1_42, %c0_43, %c0_44] : memref<4x1x128xf32, #tpu.memory_space<vmem>>, vector<1x1x128xf32>
    %98 = vector.shape_cast %97 : vector<1x1x128xf32> to vector<1x128xf32>
    %99 = vector.shape_cast %96 : vector<1x128xf32> to vector<1x1x128xf32>
    tpu.vector_store %arg7[%c1_42, %c0_43, %c0_44], %99 {strides = array<i32>} : memref<4x1x128xf32, #tpu.memory_space<vmem>>, vector<1x1x128xf32>,
    %c2_45 = arith.constant 2 : index
    %100 = memref.load %arg3[%c2_45] : memref<4xf32, #tpu.memory_space<smem>>
    %101 = vector.broadcast %100 : f32 to vector<1x128xf32>
    %102 = arith.mulf %70, %101 : vector<1x128xf32>
    %c2_46 = arith.constant 2 : index
    %103 = memref.load %arg4[%c2_46] : memref<4xf32, #tpu.memory_space<smem>>
    %104 = vector.broadcast %103 : f32 to vector<1x128xf32>
    %105 = arith.addf %102, %104 : vector<1x128xf32>
    %c2_47 = arith.constant 2 : index
    %c0_48 = arith.constant 0 : index
    %c0_49 = arith.constant 0 : index
    %106 = vector.load %arg6[%c2_47, %c0_48, %c0_49] : memref<4x1x128xf32, #tpu.memory_space<vmem>>, vector<1x1x128xf32>
    %107 = vector.shape_cast %106 : vector<1x1x128xf32> to vector<1x128xf32>
    %108 = arith.addf %105, %107 : vector<1x128xf32>
    %cst_50 = arith.constant 0.000000e+00 : f32
    %109 = vector.broadcast %cst_50 : f32 to vector<1x128xf32>
    %110 = arith.maximumf %108, %109 : vector<1x128xf32>
    %c2_51 = arith.constant 2 : index
    %c0_52 = arith.constant 0 : index
    %c0_53 = arith.constant 0 : index
    %111 = vector.load %arg7[%c2_51, %c0_52, %c0_53] : memref<4x1x128xf32, #tpu.memory_space<vmem>>, vector<1x1x128xf32>
    %112 = vector.shape_cast %111 : vector<1x1x128xf32> to vector<1x128xf32>
    %113 = vector.shape_cast %110 : vector<1x128xf32> to vector<1x1x128xf32>
    tpu.vector_store %arg7[%c2_51, %c0_52, %c0_53], %113 {strides = array<i32>} : memref<4x1x128xf32, #tpu.memory_space<vmem>>, vector<1x1x128xf32>,
    %c3_54 = arith.constant 3 : index
    %114 = memref.load %arg3[%c3_54] : memref<4xf32, #tpu.memory_space<smem>>
    %115 = vector.broadcast %114 : f32 to vector<1x128xf32>
    %116 = arith.mulf %70, %115 : vector<1x128xf32>
    %c3_55 = arith.constant 3 : index
    %117 = memref.load %arg4[%c3_55] : memref<4xf32, #tpu.memory_space<smem>>
    %118 = vector.broadcast %117 : f32 to vector<1x128xf32>
    %119 = arith.addf %116, %118 : vector<1x128xf32>
    %c3_56 = arith.constant 3 : index
    %c0_57 = arith.constant 0 : index
    %c0_58 = arith.constant 0 : index
    %120 = vector.load %arg6[%c3_56, %c0_57, %c0_58] : memref<4x1x128xf32, #tpu.memory_space<vmem>>, vector<1x1x128xf32>
    %121 = vector.shape_cast %120 : vector<1x1x128xf32> to vector<1x128xf32>
    %122 = arith.addf %119, %121 : vector<1x128xf32>
    %cst_59 = arith.constant 0.000000e+00 : f32
    %123 = vector.broadcast %cst_59 : f32 to vector<1x128xf32>
    %124 = arith.maximumf %122, %123 : vector<1x128xf32>
    %c3_60 = arith.constant 3 : index
    %c0_61 = arith.constant 0 : index
    %c0_62 = arith.constant 0 : index
    %125 = vector.load %arg7[%c3_60, %c0_61, %c0_62] : memref<4x1x128xf32, #tpu.memory_space<vmem>>, vector<1x1x128xf32>
    %126 = vector.shape_cast %125 : vector<1x1x128xf32> to vector<1x128xf32>
    %127 = vector.shape_cast %124 : vector<1x128xf32> to vector<1x1x128xf32>
    tpu.vector_store %arg7[%c3_60, %c0_61, %c0_62], %127 {strides = array<i32>} : memref<4x1x128xf32, #tpu.memory_space<vmem>>, vector<1x1x128xf32>,
    return
  }
  func.func @transform_0(%arg0: i32, %arg1: memref<4xf32, #tpu.memory_space<smem>>, %arg2: memref<3xf32, #tpu.memory_space<smem>>, %arg3: memref<4xf32, #tpu.memory_space<smem>>, %arg4: memref<4xf32, #tpu.memory_space<smem>>, %arg5: memref<2xf32, #tpu.memory_space<smem>>) -> (i32, i32, i32) {
    %c0_i32 = arith.constant 0 : i32
    %c0_i32_0 = arith.constant 0 : i32
    %c0_i32_1 = arith.constant 0 : i32
    return %c0_i32, %arg0, %c0_i32_0 : i32, i32, i32
  }
  func.func @transform_1(%arg0: i32, %arg1: memref<4xf32, #tpu.memory_space<smem>>, %arg2: memref<3xf32, #tpu.memory_space<smem>>, %arg3: memref<4xf32, #tpu.memory_space<smem>>, %arg4: memref<4xf32, #tpu.memory_space<smem>>, %arg5: memref<2xf32, #tpu.memory_space<smem>>) -> (i32, i32, i32) {
    %c0_i32 = arith.constant 0 : i32
    %c0_i32_0 = arith.constant 0 : i32
    %c0_i32_1 = arith.constant 0 : i32
    return %c0_i32, %arg0, %c0_i32_0 : i32, i32, i32
  }
  func.func @transform_2(%arg0: i32, %arg1: memref<4xf32, #tpu.memory_space<smem>>, %arg2: memref<3xf32, #tpu.memory_space<smem>>, %arg3: memref<4xf32, #tpu.memory_space<smem>>, %arg4: memref<4xf32, #tpu.memory_space<smem>>, %arg5: memref<2xf32, #tpu.memory_space<smem>>) -> (i32, i32) {
    %c0_i32 = arith.constant 0 : i32
    %c0_i32_0 = arith.constant 0 : i32
    return %arg0, %c0_i32 : i32, i32
  }
}

</mosaic_0001>

<bundles_post_ra>
// kernel: tpu_custom_call.1
= control target key start
LH: loop header
LB: loop body
LE: loop exit
PB: predicated region body
PF: predicated region fallthrough
CT: control target
= control target key end

     0   :  { %s452_s0 = inlined_call_operand.hbm [shape: f32[4], index: 0, kind: input, shape index: {}]   ;;  %s453_s5 = inlined_call_operand.vmem [shape: f32[4,1,128], index: 5, kind: input, shape index: {}]   ;;  %s454_s6 = inlined_call_operand.hbm [shape: f32[4,1,128], index: 6, kind: output, shape index: {0}]   ;;  %s455_s7 = inlined_call_operand.hbm [shape: f32[1,128], index: 7, kind: output, shape index: {1}]   ;;  %s456_s1 = inlined_call_operand.vmem [shape: f32[3], index: 1, kind: input, shape index: {}]   ;;  %s457_s2 = inlined_call_operand.vmem [shape: f32[4], index: 2, kind: input, shape index: {}]   ;;  %s458_s3 = inlined_call_operand.vmem [shape: f32[4], index: 3, kind: input, shape index: {}]   ;;  %s459_s4 = inlined_call_operand.vmem [shape: f32[2], index: 4, kind: input, shape index: {}]  }
   0x1   :  { %s202_s26 = scalar_lea.hbm %s452_s0, 16 }
   0x2   :  { %p203_p0 = scmp.ne.s32.totalorder %s452_s0, %s202_s26  ;;  %p206_p1 = scmp.lt.u32.totalorder %s202_s26, %s452_s0 }
   0x4   :  { %p208_p2 = pnand %p206_p1, %p203_p0 }
   0x6   :  { %211 = shalt.err (!%p208_p2)  }
   0x7   :  { %s310_s8 = smov [#allocation3]   ;;  %s15_s13 = sshll.u32 %s456_s1, 4  ;;  %s16_s13 = int_to_ptr.vmem [resolvable:$true] %s15_s13 }
   0x8   :  { %14 = dma.hbm_to_smem %s452_s0, 16, %s310_s8, [#allocation2] }
   0x9   :  { %s19_s16 = sshll.u32 %s457_s2, 4  ;;  %s212_s17 = scalar_lea.vmem %s16_s13, 16  ;;  %s20_s16 = int_to_ptr.vmem [resolvable:$true] %s19_s16 }
   0xa   :  { %p213_p3 = scmp.ne.s32.totalorder %s16_s13, %s212_s17  ;;  %p217_p4 = scmp.lt.s32.totalorder %s16_s13, %s16_s13 }
   0xb   :  { %p218_p5 = scmp.lt.s32.totalorder %s212_s17, %s212_s17 }
   0xd   :  { %p219_p6 = por %p218_p5, %p217_p4 }
   0xf   :  { %p220_p7 = pnand %p219_p6, %p213_p3 }
  0x11   :  { %223 = shalt.err (!%p220_p7)  }
  0x12   :  { %s311_s18 = smov [#allocation4]   ;;  %s23_s20 = sshll.u32 %s458_s3, 4  ;;  %s24_s20 = int_to_ptr.vmem [resolvable:$true] %s23_s20 }
  0x13   :  { %18 = dma.vmem_to_smem %s16_s13, 16, %s311_s18, [#allocation2] }
  0x14   :  { %s224_s1 = scalar_lea.vmem %s20_s16, 16  ;;  %p229_p9 = scmp.lt.s32.totalorder %s20_s16, %s20_s16 }
  0x15   :  { %p225_p8 = scmp.ne.s32.totalorder %s20_s16, %s224_s1  ;;  %p230_p10 = scmp.lt.s32.totalorder %s224_s1, %s224_s1 }
  0x17   :  { %p231_p11 = por %p230_p10, %p229_p9 }
  0x19   :  { %p232_p12 = pnand %p231_p11, %p225_p8 }
  0x1b   :  { %235 = shalt.err (!%p232_p12)  }
  0x1c   :  { %s312_s2 = smov [#allocation5]   ;;  %s236_s21 = scalar_lea.vmem %s24_s20, 16 }
  0x1d   :  { %22 = dma.vmem_to_smem %s20_s16, 16, %s312_s2, [#allocation2] }
  0x1e   :  { %p237_p13 = scmp.ne.s32.totalorder %s24_s20, %s236_s21  ;;  %p241_p0 = scmp.lt.s32.totalorder %s24_s20, %s24_s20 }
  0x1f   :  { %p242_p1 = scmp.lt.s32.totalorder %s236_s21, %s236_s21 }
  0x21   :  { %p243_p2 = por %p242_p1, %p241_p0 }
  0x23   :  { %p244_p3 = pnand %p243_p2, %p237_p13 }
  0x25   :  { %247 = shalt.err (!%p244_p3)  }
  0x26   :  { %s313_s22 = smov [#allocation6]   ;;  %s27_s24 = sshll.u32 %s459_s4, 4  ;;  %s28_s24 = int_to_ptr.vmem [resolvable:$true] %s27_s24 }
  0x27   :  { %26 = dma.vmem_to_smem %s24_s20, 16, %s313_s22, [#allocation2] }
  0x28   :  { %s248_s25 = scalar_lea.vmem %s28_s24, 16  ;;  %p253_p5 = scmp.lt.s32.totalorder %s28_s24, %s28_s24 }
  0x29   :  { %p249_p4 = scmp.ne.s32.totalorder %s28_s24, %s248_s25  ;;  %p254_p6 = scmp.lt.s32.totalorder %s248_s25, %s248_s25 }
  0x2b   :  { %p255_p7 = por %p254_p6, %p253_p5 }
  0x2d   :  { %p256_p8 = pnand %p255_p7, %p249_p4 }
  0x2f   :  { %259 = shalt.err (!%p256_p8)  }
  0x30   :  { %s314_s26 = smov [#allocation7]  }
  0x31   :  { %30 = dma.vmem_to_smem %s28_s24, 16, %s314_s26, [#allocation2] }
  0x32   :  { %304 = dma.done.wait [#allocation2], 80 }
  0x33   :  { %305 = vsyncadd [#allocation2], 4294967216 }
  0x34   :  { %32 = sfence }
  0x35   :  { %33 = vsyncpa [#allocation9], 0  ;;  %s38_s27 = sld [smem:[#allocation3]]  ;;  %s175_s28 = sld [smem:[#allocation3 + $0x1]] }
  0x36   :  { %s177_s29 = sld [smem:[#allocation3 + $0x2]]  ;;  %s179_s30 = sld [smem:[#allocation3 + $0x3]] }
  0x37   :  { %34 = vsyncpa [#allocation11], 0  ;;  %v37_v0 = vld [vmem:[%s453_s5] sm:$0x1]  ;;  %v174_v1 = vld [vmem:[%s453_s5 + $0x1] sm:$0x1]  ;;  %v63_v18 = vlaneseq }
  0x38   :  { %v176_v2 = vld [vmem:[%s453_s5 + $0x2] sm:$0x1]  ;;  %s59_s13 = sld [smem:[#allocation7]]  ;;  %v178_v7 = vld [vmem:[%s453_s5 + $0x3] sm:$0x1]  ;;  %s315_s16 = smov 1  }
  0x39   :  { %s316_s17 = smov 127   ;;  %v64_v19 = vand.u32 127, %v63_v18  ;;  %s180_s18 = sld [smem:[#allocation4 + $0x1]]  ;;  %v107_v45 = vld [vmem:[%s453_s5] sm:$0x1] }
  0x3a   :  { %s84_s0 = sld [smem:[#allocation4]]  ;;  %s181_s19 = sld [smem:[#allocation4 + $0x2]]  ;;  %v185_v47 = vld [vmem:[%s453_s5 + $0x1] sm:$0x1]  ;;  %v188_v50 = vld [vmem:[%s453_s5 + $0x2] sm:$0x1] }
  0x3b   :  { %v39_v3 = vstv %s38_s27  ;;  %v44_v5 = vstv %s175_s28  ;;  %v69_v20 = vand.u32 15, %v64_v19  ;;  %s182_s20 = sld [smem:[#allocation7 + $0x1]]  ;;  %s101_s1 = sld [smem:[#allocation5]]  ;;  %v191_v51 = vld [vmem:[%s453_s5 + $0x3] sm:$0x1] }
  0x3c   :  { %v40_v4 = vmul.f32 %v39_v3, %v37_v0  ;;  %v50_v6 = vstv %s177_s29  ;;  %v45_v8 = vmul.f32 %v174_v1, %v44_v5  ;;  %v56_v10 = vstv %s179_s30  ;;  %s397_s2 = sld [smem:[#allocation5 + $0x1]]  ;;  %s399_s21 = sld [smem:[#allocation5 + $0x2]] }
  0x3d   :  { %v51_v9 = vmul.f32 %v176_v2, %v50_v6  ;;  %v57_v12 = vmul.f32 %v178_v7, %v56_v10  ;;  %vm82_vm0 = vcmp.ge.s32.totalorder %v69_v20, 1  ;;  %vm90_vm1 = vcmp.lt.s32.totalorder %v69_v20, 15  ;;  %s189_s22 = sld [smem:[#allocation5 + $0x3]]  ;;  %s401_s3 = sld [smem:[#allocation6]] }
  0x3e   :  { %v46_v11 = vadd.f32 %v45_v8, %v40_v4  ;;  %v60_v14 = vstv %s59_s13  ;;  %s403_s23 = sld [smem:[#allocation6 + $0x1]]  ;;  %s405_s24 = sld [smem:[#allocation6 + $0x2]] }
  0x3f   :  { %v78_v21 = vstv %s180_s18  ;;  %s407_s25 = sld [smem:[#allocation6 + $0x3]]  ;;  %s317_s26 = smov [#allocation10]  }
  0x40   :  { %v52_v13 = vadd.f32 %v51_v9, %v46_v11  ;;  %v85_v22 = vstv %s84_s0  ;;  %v93_v27 = vstv %s181_s19  ;;  %s162_s27 = sshll.u32 %s317_s26, 4  ;;  %s163_s27 = int_to_ptr.vmem [resolvable:$true] %s162_s27 }
  0x41   :  { %v97_v32 = vstv %s182_s20  ;;  %v102_v35 = vstv %s101_s1  ;;  %s260_s12 = scalar_lea.vmem %s163_s27, 16  ;;  %s264_s13 = scalar_lea.vmem %s163_s27, 32 }
  0x42   :  { %v58_v15 = vadd.f32 %v57_v12, %v52_v13  ;;  %v112_v36 = vstv %s397_s2  ;;  %v123_v37 = vstv %s399_s21  ;;  %p261_p9 = scmp.ne.s32.totalorder %s163_s27, %s260_s12  ;;  %p265_p10 = scmp.lt.s32.totalorder %s163_s27, %s163_s27 }
  0x43   :  { %v134_v38 = vstv %s189_s22  ;;  %v105_v40 = vstv %s401_s3  ;;  %p266_p11 = scmp.lt.s32.totalorder %s264_s13, %s260_s12 }
  0x44   :  { %v61_v16 = vadd.f32 %v60_v14, %v58_v15  ;;  %v115_v41 = vstv %s403_s23  ;;  %v126_v42 = vstv %s405_s24 }
  0x45   :  { %v137_v43 = vstv %s407_s25  ;;  %p267_p12 = por %p266_p11, %p265_p10 }
  0x46   :  { %v62_v17 = vmax.f32 %v61_v16, 0.0 }
  0x47   :  { %p268_p13 = pnand %p267_p12, %p261_p9 }
  0x48   :  { %80 = vrot.lane.b32.xlu0 %v62_v17, %s315_s16  ;;  %v79_v25 = vmul.f32 %v78_v21, %v62_v17 }
  0x4c   :  { %88 = vrot.lane.b32.xlu0 %v62_v17, %s316_s17 }
  0xba   :  { %v81_v23 = vpop.permute.xlu0 %80 }
  0xbb   :  { %v83_v24 = vsel %vm82_vm0, %v81_v23, 0.0 }
  0xbc   :  { %v86_v26 = vmul.f32 %v85_v22, %v83_v24 }
  0xbe   :  { %v89_v28 = vpop.permute.xlu0 %88  ;;  %v87_v30 = vadd.f32 %v86_v26, %v79_v25 }
  0xbf   :  { %v91_v29 = vsel %vm90_vm1, %v89_v28, 0.0 }
  0xc0   :  { %v94_v31 = vmul.f32 %v93_v27, %v91_v29 }
  0xc2   :  { %v95_v33 = vadd.f32 %v94_v31, %v87_v30 }
  0xc4   :  { %v98_v34 = vadd.f32 %v97_v32, %v95_v33 }
  0xc6   :  { %v99_v39 = vmax.f32 %v98_v34, 0.0 }
  0xc8   :  { %100 = vst [vmem:[#allocation10] sm:$0x1] %v99_v39  ;;  %v103_v44 = vmul.f32 %v102_v35, %v99_v39  ;;  %v113_v46 = vmul.f32 %v112_v36, %v99_v39  ;;  %v124_v48 = vmul.f32 %v123_v37, %v99_v39  ;;  %v135_v49 = vmul.f32 %v134_v38, %v99_v39 }
  0xc9   :  { %271 = shalt.err (!%p268_p13)
}
  0xca   :  { %s272_s17 = scalar_lea.hbm %s455_s7, 16 }
  0xcb   :  { %p273_p0 = scmp.ne.s32.totalorder %s455_s7, %s272_s17  ;;  %p276_p1 = scmp.lt.u32.totalorder %s272_s17, %s455_s7 }
  0xcd   :  { %p278_p2 = pnand %p276_p1, %p273_p0 }
  0xcf   :  { %281 = shalt.err (!%p278_p2)
}
  0xd0   :  { %165 = dma.vmem_to_hbm [thread:$0]  %s163_s27, 16, %s455_s7, [#allocation11]   ;;  %v106_v52 = vadd.f32 %v105_v40, %v103_v44  ;;  %v116_v53 = vadd.f32 %v115_v41, %v113_v46  ;;  %v127_v54 = vadd.f32 %v126_v42, %v124_v48  ;;  %v138_v55 = vadd.f32 %v137_v43, %v135_v49 }
  0xd1   :  { %s318_s2 = smov [#allocation8]  }
  0xd2   :  { %s149_s21 = sshll.u32 %s318_s2, 4  ;;  %v108_v56 = vadd.f32 %v107_v45, %v106_v52  ;;  %v118_v57 = vadd.f32 %v185_v47, %v116_v53  ;;  %v129_v58 = vadd.f32 %v188_v50, %v127_v54  ;;  %v140_v59 = vadd.f32 %v191_v51, %v138_v55  ;;  %s150_s21 = int_to_ptr.vmem [resolvable:$true] %s149_s21 }
  0xd3   :  { %s282_s7 = scalar_lea.vmem %s150_s21, 64  ;;  %p287_p4 = scmp.lt.s32.totalorder %s150_s21, %s150_s21 }
  0xd4   :  { %v109_v60 = vmax.f32 %v108_v56, 0.0  ;;  %v119_v61 = vmax.f32 %v118_v57, 0.0  ;;  %v130_v62 = vmax.f32 %v129_v58, 0.0  ;;  %v141_v63 = vmax.f32 %v140_v59, 0.0  ;;  %p283_p3 = scmp.ne.s32.totalorder %s150_s21, %s282_s7  ;;  %p288_p5 = scmp.lt.s32.totalorder %s282_s7, %s282_s7 }
  0xd6   :  { %110 = vst [vmem:[#allocation8] sm:$0x1] %v109_v60  ;;  %121 = vst [vmem:[#allocation8 + $0x1] sm:$0x1] %v119_v61  ;;  %p289_p6 = por %p288_p5, %p287_p4 }
  0xd7   :  { %132 = vst [vmem:[#allocation8 + $0x2] sm:$0x1] %v130_v62  ;;  %143 = vst [vmem:[#allocation8 + $0x3] sm:$0x1] %v141_v63 }
  0xd8   :  { %p290_p7 = pnand %p289_p6, %p283_p3 }
  0xda   :  { %293 = shalt.err (!%p290_p7)
}
  0xdb   :  { %s294_s23 = scalar_lea.hbm %s454_s6, 64 }
  0xdc   :  { %p295_p8 = scmp.ne.s32.totalorder %s454_s6, %s294_s23  ;;  %p298_p9 = scmp.lt.u32.totalorder %s294_s23, %s454_s6 }
  0xde   :  { %p300_p10 = pnand %p298_p9, %p295_p8 }
  0xe0   :  { %303 = shalt.err (!%p300_p10)
}
  0xe1   :  { %s319_s28 = smov 16  }
  0xe2   :  { %155 = dma.vmem_to_hbm [thread:$0]  %s150_s21, 64, %s454_s6, [#allocation9], %s319_s28, %s319_s28, %s315_s16  }
  0xe3   :  { %306 = dma.done.wait [#allocation9], 64  }
  0xe4   :  { %307 = vsyncadd [#allocation9], 4294967232 }
  0xe5   :  { %308 = dma.done.wait [#allocation11], 16  }
  0xe6   :  { %309 = vsyncadd [#allocation11], 4294967280 }
  0xe7   :  { %172 = vsyncpa [#allocation9], 1 }
  0xe8   :  { %173 = vsyncpa [#allocation11], 1 }

</bundles_post_ra>
